<compile_context>
chip_gen: v6e
topology: v6e:2x2x1
jax: 0.10.0
libtpu: 0.0.40
codegen_flags: <defaults>
</compile_context>

<pallas_src>
import functools

import numpy as np
import jax
import jax.numpy as jnp
from jax.experimental import pallas as pl
from jax.experimental.pallas import tpu as pltpu


def _yolo_decode_kernel(x_ref, box_ref, cmax_ref, *, nH, nW, nC, nA,
                        x_scale, y_scale, half_w, half_h):
    """Decode one (batch, anchor) head slab.

    x_ref:    (5+nC, nH, nW)  raw head outputs, native dtype (e.g. bf16).
    box_ref:  (6,    nH, nW)  f32 rows: [sig(conf), x1, y1, x2, y2, class].
    cmax_ref: (1, 1)          f32 max confidence of this slab (D2H gate).
    """
    a = pl.program_id(1)

    # Per-anchor constants (0.5 * anchor_w * net/stride scale, same for h):
    # static Python floats selected with a scalar where-chain — no captured
    # array constants, no anchor tensor input.
    hw_s = half_w[nA - 1]
    hh_s = half_h[nA - 1]
    for i in range(nA - 1):
        hw_s = jnp.where(a == i, half_w[i], hw_s)
        hh_s = jnp.where(a == i, half_h[i], hh_s)

    # Activations for the first 5 rows only (tx, ty, tw, th, tconf); the
    # class logits are never cast / materialized in f32.
    head = x_ref[0:5, :, :].astype(jnp.float32)                     # (5, H, W)
    row_id = jax.lax.broadcasted_iota(jnp.int32, (5, nH, nW), 0)
    is_wh = (row_id == 2) | (row_id == 3)                           # tw, th rows
    e = jnp.exp(jnp.where(is_wh, head, -head))
    # rows 0,1,4 -> sigmoid = 1/(1+exp(-x)); rows 2,3 -> exp(x)
    act = jnp.where(is_wh, e, 1.0 / (1.0 + e))

    # Grid-cell offsets straight from iota over the (H, W) dims — no % or //.
    grid_x = jax.lax.broadcasted_iota(jnp.int32, (1, nH, nW), 2).astype(jnp.float32)
    grid_y = jax.lax.broadcasted_iota(jnp.int32, (1, nH, nW), 1).astype(jnp.float32)

    pre_x = (grid_x + act[0:1]) * x_scale                           # (1, H, W)
    pre_y = (grid_y + act[1:2]) * y_scale
    hw = act[2:3] * hw_s                                            # 0.5 * w
    hh = act[3:4] * hh_s                                            # 0.5 * h
    obj = act[4:5]

    # Class argmax (first-max tie break == torch.argmax), kept in the head's
    # native dtype; the channel axis is the major dim so this is an
    # elementwise running max over vregs (no cross-lane XLU reduce).
    cls = x_ref[5:5 + nC, :, :]                                     # (nC, H, W)
    cls_max = jnp.max(cls, axis=0, keepdims=True)
    cls_iota = jax.lax.broadcasted_iota(jnp.int32, (nC, nH, nW), 0)
    first_max = jnp.min(jnp.where(cls == cls_max, cls_iota, nC),
                        axis=0, keepdims=True)
    kind = first_max.astype(jnp.float32)

    box_ref[...] = jnp.concatenate(
        [obj, pre_x - hw, pre_y - hh, pre_x + hw, pre_y + hh, kind], axis=0)

    # Tiny per-slab confidence summary so the host can skip the big D2H copy
    # when no candidate passes the threshold.
    cmax_ref[...] = jnp.max(obj, axis=(1, 2), keepdims=True)[0]     # (1, 1)


class YoloLayer:
    """JAX/Pallas re-implementation of the PyTorch YoloLayer (inference path)."""

    def __init__(self, anchor_mask=(), num_classes=0, anchors=(), num_anchors=1,
                 stride=32, net_size=608):
        self.anchor_mask = list(anchor_mask)
        self.num_classes = num_classes
        self.anchors = list(anchors)
        self.num_anchors = num_anchors
        self.anchor_step = len(anchors) // num_anchors
        self.stride = stride
        self.net_size = net_size      # 608 in the original PyTorch code
        self.thresh = 0.6             # stored (unused on the inference path)
        self.seen = 0

    def _masked_anchors(self):
        m = []
        for a in self.anchor_mask:
            m += self.anchors[a * self.anchor_step:(a + 1) * self.anchor_step]
        return [v / self.stride for v in m]

    def forward(self, output, target=None):
        if target is not None:
            # TODO(synk): training branch (build_targets) is a host-side,
            # data-dependent double loop over GT boxes; no clean Pallas
            # equivalent, not implemented here.
            raise NotImplementedError("Training path not implemented in Pallas.")

        B, C, H, W = output.shape
        nA = len(self.anchor_mask)
        nC = self.num_classes
        C5 = 5 + nC
        assert nC >= 1, "num_classes must be >= 1"
        assert C == nA * C5, "channel dim must be nA * (5 + num_classes)"

        masked = self._masked_anchors()                 # [aw0, ah0, aw1, ...]
        x_scale = float(self.net_size) / float(W)
        y_scale = float(self.net_size) / float(H)
        half_w = tuple(0.5 * float(masked[2 * a]) * x_scale for a in range(nA))
        half_h = tuple(0.5 * float(masked[2 * a + 1]) * y_scale for a in range(nA))

        # (B, C, H, W) -> (B*nA, 5+nC, H, W): splits C and fuses B with the
        # anchor dim only — layout-preserving (no HBM relayout), H/W untouched.
        x_r = output.reshape(B * nA, C5, H, W)

        kernel = functools.partial(
            _yolo_decode_kernel, nH=H, nW=W, nC=nC, nA=nA,
            x_scale=x_scale, y_scale=y_scale, half_w=half_w, half_h=half_h)

        dense, conf_max = pl.pallas_call(
            kernel,
            out_shape=(jax.ShapeDtypeStruct((B * nA, 6, H, W), jnp.float32),
                       jax.ShapeDtypeStruct((B * nA, 1, 1), jnp.float32)),
            grid_spec=pltpu.PrefetchScalarGridSpec(
                num_scalar_prefetch=0,
                grid=(B, nA),
                in_specs=[pl.BlockSpec((None, C5, H, W),
                                       lambda b, a: (b * nA + a, 0, 0, 0))],
                out_specs=[pl.BlockSpec((None, 6, H, W),
                                        lambda b, a: (b * nA + a, 0, 0, 0)),
                           pl.BlockSpec((None, 1, 1),
                                        lambda b, a: (b * nA + a, 0, 0))],
            ),
            compiler_params=pltpu.CompilerParams(
                dimension_semantics=("parallel", "parallel")),
        )(x_r)

        # TODO(synk): when this layer runs for several detection heads
        # (strides 8/16/32), fuse the heads into a single pallas_call / single
        # D2H copy at the model-integration level.

        # Fetch only the tiny confidence summary first; skip the big PCIe copy
        # if nothing passes the threshold.
        conf_max = np.asarray(jax.block_until_ready(conf_max))
        if not (conf_max > 0.98).any():
            return None

        arr = np.asarray(dense).reshape(B, nA, 6, H, W)
        idx = np.argwhere(arr[:, :, 0, :, :] > 0.98)       # (N, 4): (b, a, h, w)
        if idx.shape[0] == 0:
            return None
        rows = arr[idx[:, 0], idx[:, 1], :, idx[:, 2], idx[:, 3]]   # (N, 6)
        # Restore torch.nonzero's (b, h, w, a) row ordering on the small
        # filtered set only (lexsort keys: last key is primary).
        order = np.lexsort((idx[:, 1], idx[:, 3], idx[:, 2], idx[:, 0]))
        return rows[order]


def _reference_numpy(x_nchw, masked_anchors, nA, nC, H, W, net_size=608.0):
    """Pure-numpy port of the PyTorch inference branch (for verification)."""
    B = x_nchw.shape[0]
    out = np.transpose(np.asarray(x_nchw, np.float32), (0, 2, 3, 1))
    out = out.reshape(B, H, W, nA, 5 + nC)
    sig = lambda v: 1.0 / (1.0 + np.exp(-v))
    mask = sig(out[..., 4]) > 0.98
    idxs = np.argwhere(mask)                    # (N, 4): (b, h, w, a)
    vecs = out[mask]
    if vecs.shape[0] == 0:
        return None
    a = idxs[:, 3]
    ma = np.asarray(masked_anchors, np.float32)
    pre_x = (idxs[:, 2].astype(np.float32) + sig(vecs[:, 0])) * net_size / W
    pre_y = (idxs[:, 1].astype(np.float32) + sig(vecs[:, 1])) * net_size / H
    pre_w = ma[a * 2] * np.exp(vecs[:, 2]) * net_size / W
    pre_h = ma[a * 2 + 1] * np.exp(vecs[:, 3]) * net_size / H
    iou = sig(vecs[:, 4])
    kind = np.argmax(vecs[:, 5:5 + nC], axis=1).astype(np.float32)
    return np.stack([iou, pre_x - 0.5 * pre_w, pre_y - 0.5 * pre_h,
                     pre_x + 0.5 * pre_w, pre_y + 0.5 * pre_h, kind], axis=1)


if __name__ == "__main__":
    B, H, W = 2, 16, 16
    num_classes = 7
    anchors = [12, 16, 19, 36, 40, 28, 36, 75, 76, 55, 72, 146,
               142, 110, 192, 243, 459, 401]
    num_anchors = 9
    anchor_mask = [6, 7, 8]
    nA = len(anchor_mask)
    C = nA * (5 + num_classes)

    key = jax.random.PRNGKey(0)
    x = jax.random.normal(key, (B, C, H, W), jnp.float32)
    # Plant a few confident detections (conf channel of anchor a is a*(5+nC)+4)
    x = x.at[0, 4, 2, 3].set(6.0)
    x = x.at[1, 16, 7, 9].set(6.5)
    x = x.at[0, 28, 0, 0].set(7.0)

    layer = YoloLayer(anchor_mask=anchor_mask, num_classes=num_classes,
                      anchors=anchors, num_anchors=num_anchors, stride=32)
    boxes = layer.forward(x, target=None)

    masked = layer._masked_anchors()
    ref = _reference_numpy(np.asarray(x), masked, nA, num_classes, H, W)

    assert boxes is not None and ref is not None
    assert boxes.shape == ref.shape
    np.testing.assert_allclose(boxes, ref, rtol=1e-5, atol=1e-4)
    print("KERNEL_OK")
</pallas_src>

<mosaic_0001>
module attributes {stable_mosaic.version = 11 : i64} {
  func.func @_yolo_decode_kernel(%arg0: i32, %arg1: i32, %arg2: memref<1x12x16x16xf32, #tpu.memory_space<vmem>>, %arg3: memref<1x6x16x16xf32, #tpu.memory_space<vmem>>, %arg4: memref<1x1x1xf32, #tpu.memory_space<vmem>>) attributes {dimension_semantics = [#tpu.dimension_semantics<parallel>, #tpu.dimension_semantics<parallel>], iteration_bounds = array<i64: 2, 3>, scalar_prefetch = 0 : i64, scratch_operands = 0 : i64, tpu.core_type = #tpu.core_type<tc>, window_params = [{transform_indices = @transform_0, window_bounds = array<i64: 1, 12, 16, 16>}, {transform_indices = @transform_1, window_bounds = array<i64: 1, 6, 16, 16>}, {transform_indices = @transform_2, window_bounds = array<i64: 1, 1, 1>}]} {
    %c0_i32 = arith.constant 0 : i32
    %0 = arith.cmpi eq, %arg1, %c0_i32 : i32
    %cst = arith.constant 8.431250e+01 : f32
    %cst_0 = arith.constant 272.53125 : f32
    %1 = arith.select %0, %cst, %cst_0 : f32
    %c0_i32_1 = arith.constant 0 : i32
    %2 = arith.cmpi eq, %arg1, %c0_i32_1 : i32
    %cst_2 = arith.constant 6.531250e+01 : f32
    %cst_3 = arith.constant 238.09375 : f32
    %3 = arith.select %2, %cst_2, %cst_3 : f32
    %c1_i32 = arith.constant 1 : i32
    %4 = arith.cmpi eq, %arg1, %c1_i32 : i32
    %cst_4 = arith.constant 1.140000e+02 : f32
    %5 = arith.select %4, %cst_4, %1 : f32
    %c1_i32_5 = arith.constant 1 : i32
    %6 = arith.cmpi eq, %arg1, %c1_i32_5 : i32
    %cst_6 = arith.constant 144.28125 : f32
    %7 = arith.select %6, %cst_6, %3 : f32
    %c0 = arith.constant 0 : index
    %c0_7 = arith.constant 0 : index
    %c0_8 = arith.constant 0 : index
    %c0_9 = arith.constant 0 : index
    %8 = vector.load %arg2[%c0, %c0_7, %c0_8, %c0_9] : memref<1x12x16x16xf32, #tpu.memory_space<vmem>>, vector<1x5x16x16xf32>
    %9 = vector.shape_cast %8 : vector<1x5x16x16xf32> to vector<5x16x16xf32>
    %10 = tpu.iota {dimensions = array<i32: 0>} : vector<5x16x16xi32>
    %c2_i32 = arith.constant 2 : i32
    %11 = vector.broadcast %c2_i32 : i32 to vector<5x16x16xi32>
    %12 = arith.cmpi eq, %10, %11 : vector<5x16x16xi32>
    %c3_i32 = arith.constant 3 : i32
    %13 = vector.broadcast %c3_i32 : i32 to vector<5x16x16xi32>
    %14 = arith.cmpi eq, %10, %13 : vector<5x16x16xi32>
    %15 = arith.ori %12, %14 : vector<5x16x16xi1>
    %cst_10 = arith.constant 0.000000e+00 : f32
    %16 = vector.broadcast %cst_10 : f32 to vector<5x16x16xf32>
    %17 = arith.subf %16, %9 : vector<5x16x16xf32>
    %18 = arith.select %15, %9, %17 : vector<5x16x16xi1>, vector<5x16x16xf32>
    %19 = math.exp %18 : vector<5x16x16xf32>
    %cst_11 = arith.constant 1.000000e+00 : f32
    %20 = vector.broadcast %cst_11 : f32 to vector<5x16x16xf32>
    %21 = arith.addf %20, %19 : vector<5x16x16xf32>
    %cst_12 = arith.constant 1.000000e+00 : f32
    %22 = vector.broadcast %cst_12 : f32 to vector<5x16x16xf32>
    %23 = arith.divf %22, %21 : vector<5x16x16xf32>
    %24 = arith.select %15, %19, %23 : vector<5x16x16xi1>, vector<5x16x16xf32>
    %25 = tpu.iota {dimensions = array<i32: 2>} : vector<1x16x16xi32>
    %26 = arith.sitofp %25 : vector<1x16x16xi32> to vector<1x16x16xf32>
    %27 = tpu.iota {dimensions = array<i32: 1>} : vector<1x16x16xi32>
    %28 = arith.sitofp %27 : vector<1x16x16xi32> to vector<1x16x16xf32>
    %29 = vector.extract_strided_slice %24 {offsets = [0, 0, 0], sizes = [1, 16, 16], strides = [1, 1, 1]} : vector<5x16x16xf32> to vector<1x16x16xf32>
    %30 = arith.addf %26, %29 : vector<1x16x16xf32>
    %cst_13 = arith.constant 3.800000e+01 : f32
    %31 = vector.broadcast %cst_13 : f32 to vector<1x16x16xf32>
    %32 = arith.mulf %30, %31 : vector<1x16x16xf32>
    %33 = vector.extract_strided_slice %24 {offsets = [1, 0, 0], sizes = [1, 16, 16], strides = [1, 1, 1]} : vector<5x16x16xf32> to vector<1x16x16xf32>
    %34 = arith.addf %28, %33 : vector<1x16x16xf32>
    %cst_14 = arith.constant 3.800000e+01 : f32
    %35 = vector.broadcast %cst_14 : f32 to vector<1x16x16xf32>
    %36 = arith.mulf %34, %35 : vector<1x16x16xf32>
    %37 = vector.extract_strided_slice %24 {offsets = [2, 0, 0], sizes = [1, 16, 16], strides = [1, 1, 1]} : vector<5x16x16xf32> to vector<1x16x16xf32>
    %38 = vector.broadcast %5 : f32 to vector<1x16x16xf32>
    %39 = arith.mulf %37, %38 : vector<1x16x16xf32>
    %40 = vector.extract_strided_slice %24 {offsets = [3, 0, 0], sizes = [1, 16, 16], strides = [1, 1, 1]} : vector<5x16x16xf32> to vector<1x16x16xf32>
    %41 = vector.broadcast %7 : f32 to vector<1x16x16xf32>
    %42 = arith.mulf %40, %41 : vector<1x16x16xf32>
    %43 = vector.extract_strided_slice %24 {offsets = [4, 0, 0], sizes = [1, 16, 16], strides = [1, 1, 1]} : vector<5x16x16xf32> to vector<1x16x16xf32>
    %c0_15 = arith.constant 0 : index
    %c5 = arith.constant 5 : index
    %c0_16 = arith.constant 0 : index
    %c0_17 = arith.constant 0 : index
    %44 = vector.load %arg2[%c0_15, %c5, %c0_16, %c0_17] : memref<1x12x16x16xf32, #tpu.memory_space<vmem>>, vector<1x7x16x16xf32>
    %45 = vector.shape_cast %44 : vector<1x7x16x16xf32> to vector<7x16x16xf32>
    %cst_18 = arith.constant dense<0xFF800000> : vector<16x16xf32>
    %46 = vector.multi_reduction <maximumf>, %45, %cst_18 [0] : vector<7x16x16xf32> to vector<16x16xf32>
    %47 = vector.shape_cast %46 : vector<16x16xf32> to vector<1x16x16xf32>
    %48 = tpu.iota {dimensions = array<i32: 0>} : vector<7x16x16xi32>
    %49 = vector.broadcast %47 : vector<1x16x16xf32> to vector<7x16x16xf32>
    %50 = arith.cmpf oeq, %45, %49 : vector<7x16x16xf32>
    %c7_i32 = arith.constant 7 : i32
    %51 = vector.broadcast %c7_i32 : i32 to vector<7x16x16xi32>
    %52 = arith.select %50, %48, %51 : vector<7x16x16xi1>, vector<7x16x16xi32>
    %cst_19 = arith.constant dense<2147483647> : vector<16x16xi32>
    %53 = vector.multi_reduction <minsi>, %52, %cst_19 [0] : vector<7x16x16xi32> to vector<16x16xi32>
    %54 = vector.shape_cast %53 : vector<16x16xi32> to vector<1x16x16xi32>
    %55 = arith.sitofp %54 : vector<1x16x16xi32> to vector<1x16x16xf32>
    %56 = arith.subf %32, %39 : vector<1x16x16xf32>
    %57 = arith.subf %36, %42 : vector<1x16x16xf32>
    %58 = arith.addf %32, %39 : vector<1x16x16xf32>
    %59 = arith.addf %36, %42 : vector<1x16x16xf32>
    %60 = tpu.concatenate %43, %56, %57, %58, %59, %55 in 0 : vector<1x16x16xf32>, vector<1x16x16xf32>, vector<1x16x16xf32>, vector<1x16x16xf32>, vector<1x16x16xf32>, vector<1x16x16xf32> -> vector<6x16x16xf32>
    %c0_20 = arith.constant 0 : index
    %c0_21 = arith.constant 0 : index
    %c0_22 = arith.constant 0 : index
    %c0_23 = arith.constant 0 : index
    %61 = vector.load %arg3[%c0_20, %c0_21, %c0_22, %c0_23] : memref<1x6x16x16xf32, #tpu.memory_space<vmem>>, vector<1x6x16x16xf32>
    %62 = vector.shape_cast %61 : vector<1x6x16x16xf32> to vector<6x16x16xf32>
    %63 = vector.shape_cast %60 : vector<6x16x16xf32> to vector<1x6x16x16xf32>
    tpu.vector_store %arg3[%c0_20, %c0_21, %c0_22, %c0_23], %63 {strides = array<i32>} : memref<1x6x16x16xf32, #tpu.memory_space<vmem>>, vector<1x6x16x16xf32>,
    %cst_24 = arith.constant dense<0xFF800000> : vector<1xf32>
    %64 = vector.multi_reduction <maximumf>, %43, %cst_24 [1, 2] : vector<1x16x16xf32> to vector<1xf32>
    %65 = vector.shape_cast %64 : vector<1xf32> to vector<1x1x1xf32>
    %66 = vector.shape_cast %65 : vector<1x1x1xf32> to vector<1x1xf32>
    %c0_25 = arith.constant 0 : index
    %c0_26 = arith.constant 0 : index
    %c0_27 = arith.constant 0 : index
    %67 = vector.load %arg4[%c0_25, %c0_26, %c0_27] : memref<1x1x1xf32, #tpu.memory_space<vmem>>, vector<1x1x1xf32>
    %68 = vector.shape_cast %67 : vector<1x1x1xf32> to vector<1x1xf32>
    %69 = vector.shape_cast %66 : vector<1x1xf32> to vector<1x1x1xf32>
    tpu.vector_store %arg4[%c0_25, %c0_26, %c0_27], %69 {strides = array<i32>} : memref<1x1x1xf32, #tpu.memory_space<vmem>>, vector<1x1x1xf32>,
    return
  }
  func.func @transform_0(%arg0: i32, %arg1: i32) -> (i32, i32, i32, i32) {
    %c3_i32 = arith.constant 3 : i32
    %0 = arith.muli %arg0, %c3_i32 : i32
    %1 = arith.addi %0, %arg1 : i32
    %c0_i32 = arith.constant 0 : i32
    %c0_i32_0 = arith.constant 0 : i32
    %c0_i32_1 = arith.constant 0 : i32
    %c0_i32_2 = arith.constant 0 : i32
    return %1, %c0_i32, %c0_i32_0, %c0_i32_1 : i32, i32, i32, i32
  }
  func.func @transform_1(%arg0: i32, %arg1: i32) -> (i32, i32, i32, i32) {
    %c3_i32 = arith.constant 3 : i32
    %0 = arith.muli %arg0, %c3_i32 : i32
    %1 = arith.addi %0, %arg1 : i32
    %c0_i32 = arith.constant 0 : i32
    %c0_i32_0 = arith.constant 0 : i32
    %c0_i32_1 = arith.constant 0 : i32
    %c0_i32_2 = arith.constant 0 : i32
    return %1, %c0_i32, %c0_i32_0, %c0_i32_1 : i32, i32, i32, i32
  }
  func.func @transform_2(%arg0: i32, %arg1: i32) -> (i32, i32, i32) {
    %c3_i32 = arith.constant 3 : i32
    %0 = arith.muli %arg0, %c3_i32 : i32
    %1 = arith.addi %0, %arg1 : i32
    %c0_i32 = arith.constant 0 : i32
    %c0_i32_0 = arith.constant 0 : i32
    %c0_i32_1 = arith.constant 0 : i32
    return %1, %c0_i32, %c0_i32_0 : i32, i32, i32
  }
}

</mosaic_0001>

<bundles_post_ra>
// kernel: tpu_custom_call.1
= control target key start
LH: loop header
LB: loop body
LE: loop exit
PB: predicated region body
PF: predicated region fallthrough
CT: control target
= control target key end

     0   :  { %8 = vsyncpa [#allocation3], 0  ;;  %s1272_s0 = inlined_call_operand.hbm [shape: f32[6,12,16,16], index: 0, kind: input, shape index: {}]   ;;  %s1273_s1 = inlined_call_operand.hbm [shape: f32[6,6,16,16], index: 1, kind: output, shape index: {0}]   ;;  %s1274_s2 = inlined_call_operand.vmem [shape: f32[6,1,1], index: 2, kind: output, shape index: {1}]  }
   0x1   :  { %10 = vsyncpa [#allocation3 + $0x1], 0 }
   0x2   :  { %11 = vsyncpa [#allocation4], 0 }
   0x3   :  { %13 = vsyncpa [#allocation4 + $0x1], 0  ;;  %s894_s9 = smov 0   ;;  %s896_s10 = smov 0  }
   0x4   :  { %s898_s11 = smov 0   ;;  %s900_s12 = smov 0  }
   0x5   :  { %s902_s13 = smov 0   ;;  %s904_s14 = smov 0  }
   0x6   :  { %s906_s15 = smov 0   ;;  %s908_s16 = smov 0  }
   0x7 LB: > { %s603_s17 = sadd.s32 4294967295, %s870_s16   ;;  %s604_s18 = sadd.s32 4294967294, %s870_s16   ;;  %s870_s16 = sphi %s908_s16, %s19_s16   ;;  %s866_s15 = sphi %s906_s15, %s1286_s15   ;;  %s862_s14 = sphi %s904_s14, %s1285_s14   ;;  %s858_s13 = sphi %s902_s13, %s1284_s13   ;;  %s854_s12 = sphi %s900_s12, %s1283_s12   ;;  %s850_s11 = sphi %s898_s11, %s1282_s11   ;;  %s846_s10 = sphi %s896_s10, %s1281_s10   ;;  %s842_s9 = sphi %s894_s9, %s1280_s9  }
   0x8   : > { %s28_s19 = sadd.s32 1, %s862_s14  ;;  %s31_s20 = sadd.s32 1, %s866_s15 }
   0x9   : > { %p29_p0 = scmp.ge.s32.totalorder %s28_s19, 3  ;;  %s35_s21 = smul.u32 3, %s866_s15 }
   0xa   : > { %s42_s22 = sadd.s32 1, %s850_s11  ;;  %p49_p1 = scmp.ne.s32.totalorder %s850_s11, %s846_s10 }
   0xb   : > { %s1288_s19 = smov (%p29_p0, %s28_s19), 0  ;;  %s1290_s20 = smov (!%p29_p0, %s31_s20), %s866_s15 }
   0xc   : > { %s36_s23 = sadd.s32 %s862_s14, %s35_s21  ;;  %p50_p2 = scmp.eq.s32.totalorder %s870_s16, 0 }
   0xd   : > { %p33_p3 = scmp.ge.s32.totalorder %s1290_s20, 2  ;;  %p55_p4 = scmp.ne.s32.totalorder %s846_s10, %s842_s9 }
   0xe   : > { %p952_p5 = por %p50_p2, %p49_p1  ;;  %p56_p6 = scmp.eq.s32.totalorder %s603_s17, 0 }
   0xf   : > { %s1292_s20 = smov (%p33_p3, %s1290_s20), 0  ;;  %p83_p8 = scmp.eq.s32.totalorder %s603_s17, 5 }
  0x10   : > { %p958_p7 = por %p56_p6, %p55_p4  ;;  %s37_s26 = smul.u32 3, %s1292_s20 }
  0x11   : > { %p89_p9 = scmp.eq.s32.totalorder %s604_s18, 5  ;;  %p966_p10 = por %p83_p8, %p49_p1 }
  0x12   : > { %s38_s28 = sadd.s32 %s37_s26, %s1288_s19  ;;  %p643_p12 = scmp.lt.s32.totalorder %s870_s16, 6 }
  0x13   : > { %p971_p11 = por %p89_p9, %p55_p4  ;;  %s39_s30 = ssub.s32 %s36_s23, %s38_s28 }
  0x14   : > { %p40_p13 = scmp.eq.s32.totalorder %s39_s30, 0  ;;  %s139_s3 = sand.u32 1, %s850_s11  }
  0x15   : > { %s626_s4 = smul.u32 192, %s139_s3  ;;  %p982_p0 = pnand %p643_p12, %p952_p5 }
  0x16   : > { %s978_s5 = scalar_select %p40_p13, %s850_s11, %s42_s22  }
  0x17   : > { %s627_s6 = smul.u32 3072, %s36_s23  ;;  %s143_s7 = scalar_lea.vmem [#allocation2], %s626_s4 }
  0x18   : > { %s152_s8 = sshll.u32 %s143_s7, 4  ;;  %p608_p1 = scmp.ge.s32.totalorder %s870_s16, 1  ;;  %s153_s8 = int_to_ptr.vmem [resolvable:$true] %s152_s8 }
  0x19   : > { %s151_s26 = scalar_lea.hbm %s1272_s0, %s627_s6  ;;  %s140_s28 = scalar_lea.sflag [#allocation3], %s139_s3 }
  0x1a   : > { %p748_p2 = pneg %p982_p0  ;;  %s759_s22 = scalar_lea.vmem %s153_s8, 3072 }
  0x1b   : > { %p760_p3 = scmp.ne.s32.totalorder %s153_s8, %s759_s22  ;;  %s872_s23 = smov [#allocation2]  }
  0x1c   : > { %s764_s24 = sshll.u32 %s872_s23, 4  ;;  %s765_s24 = int_to_ptr.vmem [resolvable:$false] %s764_s24 }
  0x1d   : > { %p762_p4 = pnand %p760_p3, %p748_p2  ;;  %s766_s30 = scalar_lea.vmem %s765_s24, 6144 }
  0x1e   : > { %p767_p5 = scmp.lt.s32.totalorder %s153_s8, %s765_s24  ;;  %p768_p8 = scmp.lt.s32.totalorder %s766_s30, %s759_s22 }
  0x1f   : > { %p763_p6 = pneg %p762_p4 }
  0x20   : > { %p769_p9 = por %p768_p8, %p767_p5 }
  0x22   : > { %p770_p12 = pnand %p769_p9, %p763_p6 }
  0x24   : > { %773 = shalt.err (!%p770_p12)
}
  0x25   : > { %s873_s4 = smov 128   ;;  %s874_s3 = smov 8  }
  0x26   : > { %638 = dma.hbm_to_vmem [thread:$0]  (!%p982_p0), %s151_s26, 3072, %s153_s8, %s140_s28, %s873_s4, %s873_s4, %s874_s3  }
  0x27   : > { %p160_p13 = scmp.lt.s32.totalorder %s870_s16, 7 }
  0x29   : > { %p161_p2 = pnand %p608_p1, %p160_p13 }
  0x2a   : > { %s998_s6 = sand.u32 (!%p161_p2), 1, %s846_s10  }
  0x2b   : > { %164 = sbr.rel (%p161_p2) target bundleno = 239 (0xef), region = 24  ;;  %s167_s18 = scalar_lea.sflag (!%p161_p2), [#allocation3], %s998_s6 }
  0x2c   : > { %s628_s7 = smul.u32 (!%p161_p2), 192, %s998_s6 }
  0x2e   : > { %s1002_s21 = scalar_lea.vmem (!%p161_p2), [#allocation2], %s628_s7 }
  0x30   : > { %833 = dma.done.wait (%p958_p7), %s167_s18, 3072  }
  0x31   : > { %835 = vsyncadd (%p958_p7), %s167_s18, 4294964224  ;;  %v221_v0 = vld [vmem:[%s1002_s21 + $0x40] sm:$0xff]  ;;  %v222_v1 = vld [vmem:[%s1002_s21 + $0x48] sm:$0xff]  ;;  %s629_s25 = smul.u32 96, %s998_s6  ;;  %vm340_vm0 = vcmask 130048   ;;  %p207_p7 = scmp.eq.s32.totalorder %s854_s12, 0 }
  0x32   : > { %v231_v2 = vsub.f32 0.0, %v221_v0  ;;  %v232_v3 = vsub.f32 0.0, %v222_v1  ;;  %v213_v9 = vld [vmem:[%s1002_s21] sm:$0xff]  ;;  %v214_v10 = vld [vmem:[%s1002_s21 + $0x8] sm:$0xff]  ;;  %v215_v11 = vld [vmem:[%s1002_s21 + $0x10] sm:$0xff]  ;;  %p210_p0 = scmp.eq.s32.totalorder %s854_s12, 1 }
  0x33   : > { %v216_v13 = vld [vmem:[%s1002_s21 + $0x18] sm:$0xff]  ;;  %v223_v14 = vsub.f32 0.0, %v213_v9  ;;  %v224_v15 = vsub.f32 0.0, %v214_v10  ;;  %v225_v16 = vsub.f32 0.0, %v215_v11  ;;  %s1015_s8 = scalar_lea.vmem [#allocation5], %s629_s25  ;;  %v1024_v28 = vld [vmem:[%s1002_s21 + $0x50] sm:$0xff]  ;;  %v303_v9 = vlaneseq }
  0x34   : > { %v259_v4 = vmul.f32 1.442695, %v231_v2  ;;  %v261_v5 = vmul.f32 1.442695, %v232_v3  ;;  %v226_v17 = vsub.f32 0.0, %v216_v13  ;;  %v1027_v29 = vld [vmem:[%s1002_s21 + $0x58] sm:$0xff] }
  0x35   : > { %v243_v18 = vmul.f32 1.442695, %v223_v14  ;;  %v245_v19 = vmul.f32 1.442695, %v224_v15  ;;  %v247_v20 = vmul.f32 1.442695, %v225_v16 }
  0x36   : > { %714 = vpow2.f32 %v259_v4  ;;  %v249_v21 = vmul.f32 1.442695, %v226_v17  ;;  %v1030_v30 = vld [vmem:[%s1002_s21 + $0x70] sm:$0xff]  ;;  %v1033_v33 = vld [vmem:[%s1002_s21 + $0x78] sm:$0xff]  ;;  %v341_v34 = vsel %vm340_vm0, %v1024_v28, -inf  ;;  %v217_v37 = vld [vmem:[%s1002_s21 + $0x20] sm:$0xff] }
  0x37   : > { %716 = vpow2.f32 %v261_v5  ;;  %v343_v35 = vsel %vm340_vm0, %v1030_v30, -inf  ;;  %v218_v38 = vld [vmem:[%s1002_s21 + $0x28] sm:$0xff]  ;;  %v219_v39 = vld [vmem:[%s1002_s21 + $0x30] sm:$0xff]  ;;  %v354_v41 = vsel %vm340_vm0, %v1027_v29, -inf  ;;  %v356_v42 = vsel %vm340_vm0, %v1033_v33, -inf  ;;  %v220_v44 = vld [vmem:[%s1002_s21 + $0x38] sm:$0xff] }
  0x38   : > { %v251_v45 = vmul.f32 1.442695, %v217_v37  ;;  %v253_v46 = vmul.f32 1.442695, %v218_v38  ;;  %v344_v47 = vmax.f32 %v341_v34, %v343_v35  ;;  %v255_v48 = vmul.f32 1.442695, %v219_v39 }
  0x39   : > { %v257_v49 = vmul.f32 1.442695, %v220_v44  ;;  %v1048_v51 = vld [vmem:[%s1002_s21 + $0x60] sm:$0xff]  ;;  %v1051_v53 = vld [vmem:[%s1002_s21 + $0x68] sm:$0xff]  ;;  %v357_v57 = vmax.f32 %v354_v41, %v356_v42  ;;  %v1062_v58 = vld [vmem:[%s1002_s21 + $0x90] sm:$0xff]  ;;  %v307_v15 = vshrl.u32 %v303_v9, 7 }
  0x3a   : > { %v1054_v54 = vld [vmem:[%s1002_s21 + $0x80] sm:$0xff]  ;;  %v1057_v55 = vld [vmem:[%s1002_s21 + $0x88] sm:$0xff]  ;;  %v342_v56 = vsel %vm340_vm0, %v1048_v51, -inf  ;;  %v1065_v59 = vld [vmem:[%s1002_s21 + $0x98] sm:$0xff]  ;;  %v355_v62 = vsel %vm340_vm0, %v1051_v53, -inf  ;;  %v347_v3 = vsel %vm340_vm0, %v1062_v58, -inf }
  0x3b   : > { %v1068_v60 = vld [vmem:[%s1002_s21 + $0xa0] sm:$0xff]  ;;  %v345_v61 = vsel %vm340_vm0, %v1054_v54, -inf  ;;  %v358_v63 = vsel %vm340_vm0, %v1057_v55, -inf  ;;  %v1077_v0 = vld [vmem:[%s1002_s21 + $0xa8] sm:$0xff]  ;;  %v1080_v1 = vld [vmem:[%s1002_s21 + $0xb0] sm:$0xff]  ;;  %v360_v11 = vsel %vm340_vm0, %v1065_v59, -inf }
  0x3c   : > { %v346_v2 = vmax.f32 %v342_v56, %v345_v61  ;;  %v349_v4 = vsel %vm340_vm0, %v1068_v60, -inf  ;;  %v1087_v5 = vld [vmem:[%s1002_s21 + $0xb8] sm:$0xff]  ;;  %v361_v13 = vmax.f32 %v357_v57, %v360_v11  ;;  %v362_v14 = vsel %vm340_vm0, %v1077_v0, -inf  ;;  %s208_s17 = scalar_select %p207_p7, 84.3125, 272.53125 }
  0x3d   : > { %v364_v17 = vsel %vm340_vm0, %v1087_v5, -inf  ;;  %s209_s26 = scalar_select %p207_p7, 65.3125, 238.09375  ;;  %v875_v37 = vmov 7  }
  0x3e   : > { %v350_v10 = vmax.f32 %v346_v2, %v349_v4  ;;  %s1294_s17 = smov (%p210_p0, %s208_s17), 114.0  ;;  %s200_s28 = smul.u32 3, %s858_s13 }
  0x3f   : > { %s1296_s26 = smov (%p210_p0, %s209_s26), 144.28125  ;;  %v319_v42 = vstv %s1294_s17  ;;  %s469_s4 = scalar_lea.sflag [#allocation4], %s998_s6 }
  0x40   : > { %s1174_s13 = sadd.s32 %s854_s12, %s200_s28  ;;  %s489_s12 = sshll.u32 %s1015_s8, 4  ;;  %s1204_s12 = int_to_ptr.vmem [resolvable:$true] %s489_s12 }
  0x41   : > { %s630_s22 = smul.u32 1536, %s1174_s13  ;;  %s774_s3 = scalar_lea.vmem %s1204_s12, 1536 }
  0x42   : > { %p775_p1 = scmp.ne.s32.totalorder %s1204_s12, %s774_s3  ;;  %s876_s7 = smov [#allocation5]  }
  0x43   : > { %v715_v6 = vpop.eup %714  ;;  %s1188_s30 = scalar_lea.hbm %s1273_s1, %s630_s22  ;;  %s778_s18 = sshll.u32 %s876_s7, 4  ;;  %s779_s18 = int_to_ptr.vmem [resolvable:$false] %s778_s18 }
  0x44   : > { %v717_v7 = vpop.eup %716  ;;  %v271_v8 = vadd.f32 1.0, %v715_v6  ;;  %v348_v6 = vmax.f32 %v344_v47, %v347_v3  ;;  %p776_p3 = pnand %p775_p1, %p966_p10  ;;  %s780_s21 = scalar_lea.vmem %s779_s18, 3072 }
  0x45   : > { %v272_v12 = vadd.f32 1.0, %v717_v7  ;;  %v351_v7 = vsel %vm340_vm0, %v1080_v1, -inf  ;;  %p781_p6 = scmp.lt.s32.totalorder %s1204_s12, %s779_s18  ;;  %p782_p5 = scmp.lt.s32.totalorder %s780_s21, %s774_s3 }
  0x46   : > { %718 = vrcp.f32 %v271_v8  ;;  %v359_v8 = vmax.f32 %v355_v62, %v358_v63  ;;  %p777_p4 = pneg %p776_p3 }
  0x47   : > { %720 = vrcp.f32 %v272_v12  ;;  %v352_v12 = vmax.f32 %v348_v6, %v351_v7  ;;  %p783_p8 = por %p782_p5, %p781_p6 }
  0x48   : > { %722 = vpow2.f32 %v243_v18  ;;  %v363_v16 = vmax.f32 %v359_v8, %v362_v14 }
  0x49   : > { %724 = vpow2.f32 %v245_v19  ;;  %v353_v18 = vmax.f32 %v352_v12, %v350_v10  ;;  %v365_v19 = vmax.f32 %v361_v13, %v364_v17  ;;  %p784_p9 = pnand %p783_p8, %p777_p4 }
  0x4a   : > { %726 = vpow2.f32 %v247_v20  ;;  %v304_v20 = vand.u32 127, %v303_v9 }
  0x4b   : > { %728 = vpow2.f32 %v249_v21  ;;  %v308_v21 = vadd.s32 8, %v307_v15  ;;  %vm367_vm1 = vcmp.eq.f32.partialorder %v1024_v28, %v353_v18  ;;  %vm369_vm2 = vcmp.eq.f32.partialorder %v1048_v51, %v353_v18 }
  0x4c   : > { %vm371_vm3 = vcmp.eq.f32.partialorder %v1030_v30, %v353_v18  ;;  %vm373_vm7 = vcmp.eq.f32.partialorder %v1054_v54, %v353_v18  ;;  %vm375_vm9 = vcmp.eq.f32.partialorder %v1062_v58, %v353_v18  ;;  %vm377_vm11 = vcmp.eq.f32.partialorder %v1068_v60, %v353_v18 }
  0x4d   : > { %vm379_vm13 = vcmp.eq.f32.partialorder %v1080_v1, %v353_v18  ;;  %v381_v38 = vsel %vm367_vm1, 0, %v875_v37  ;;  %v322_v28 = vstv %s1296_s26  ;;  %v389_v30 = vsel %vm375_vm9, 4, %v875_v37 }
  0x4e   : > { %v393_v63 = vsel %vm379_vm13, 6, %v875_v37  ;;  %v395_v58 = vsel %vm340_vm0, %v381_v38, 2147483647  ;;  %v403_v1 = vsel %vm340_vm0, %v389_v30, 2147483647 }
  0x4f   : > { %v409_v8 = vsel %vm340_vm0, %v393_v63, 2147483647 }
  0x53   : > { %v719_v22 = vpop.eup %718 }
  0x54   : > { %v721_v23 = vpop.eup %720  ;;  %443 = vst.msk [vmem:[%s1015_s8] sm:$0xff] %vm340_vm0, %v719_v22  ;;  %v455_v24 = vsel %vm340_vm0, %v719_v22, -inf  ;;  %v366_v22 = vmax.f32 %v365_v19, %v363_v16 }
  0x55   : > { %444 = vst.msk [vmem:[%s1015_s8 + $0x8] sm:$0xff] %vm340_vm0, %v721_v23  ;;  %v456_v25 = vsel %vm340_vm0, %v721_v23, -inf  ;;  %v723_v26 = vpop.eup %722  ;;  %v305_v23 = vcvt.s32.f32 %v304_v20 }
  0x56   : > { %v457_v27 = vmax.f32 %v455_v24, %v456_v25  ;;  %v725_v31 = vpop.eup %724  ;;  %v263_v32 = vadd.f32 1.0, %v723_v26  ;;  %v309_v24 = vcvt.s32.f32 %v307_v15  ;;  %v310_v25 = vcvt.s32.f32 %v308_v21 }
  0x57   : > { %v727_v36 = vpop.eup %726  ;;  %v264_v40 = vadd.f32 1.0, %v725_v31  ;;  %vm368_vm4 = vcmp.eq.f32.partialorder %v1027_v29, %v366_v22  ;;  %vm370_vm5 = vcmp.eq.f32.partialorder %v1051_v53, %v366_v22  ;;  %vm372_vm6 = vcmp.eq.f32.partialorder %v1033_v33, %v366_v22 }
  0x58   : > { %458 = vmax.xlane.f32.xlu0 %v457_v27  ;;  %v729_v43 = vpop.eup %728  ;;  %730 = vrcp.f32 %v263_v32  ;;  %v265_v50 = vadd.f32 1.0, %v727_v36  ;;  %vm374_vm8 = vcmp.eq.f32.partialorder %v1057_v55, %v366_v22  ;;  %vm376_vm10 = vcmp.eq.f32.partialorder %v1065_v59, %v366_v22 }
  0x59   : > { %732 = vrcp.f32 %v264_v40  ;;  %v266_v52 = vadd.f32 1.0, %v729_v43  ;;  %vm378_vm12 = vcmp.eq.f32.partialorder %v1077_v0, %v366_v22  ;;  %vm380_vm14 = vcmp.eq.f32.partialorder %v1087_v5, %v366_v22 }
  0x5a   : > { %734 = vpow2.f32 %v251_v45  ;;  %v382_v39 = vsel %vm368_vm4, 0, %v875_v37  ;;  %v383_v43 = vsel %vm369_vm2, 1, %v875_v37  ;;  %v384_v44 = vsel %vm370_vm5, 1, %v875_v37 }
  0x5b   : > { %736 = vpow2.f32 %v253_v46  ;;  %v385_v29 = vsel %vm371_vm3, 2, %v875_v37  ;;  %v386_v51 = vsel %vm372_vm6, 2, %v875_v37  ;;  %v388_v57 = vsel %vm374_vm8, 3, %v875_v37 }
  0x5c   : > { %738 = vpow2.f32 %v255_v48  ;;  %v390_v61 = vsel %vm376_vm10, 4, %v875_v37  ;;  %v391_v33 = vsel %vm377_vm11, 5, %v875_v37  ;;  %v392_v54 = vsel %vm378_vm12, 5, %v875_v37 }
  0x5d   : > { %740 = vpow2.f32 %v257_v49  ;;  %v394_v55 = vsel %vm380_vm14, 6, %v875_v37  ;;  %v396_v59 = vsel %vm340_vm0, %v383_v43, 2147483647  ;;  %v397_v4 = vsel %vm340_vm0, %v385_v29, 2147483647 }
  0x5e   : > { %742 = vrcp.f32 %v265_v50  ;;  %vm398_vm15 = vcmp.lt.s32.totalorder %v395_v58, %v397_v4  ;;  %v406_v5 = vsel %vm340_vm0, %v391_v33, 2147483647  ;;  %v414_v9 = vsel %vm340_vm0, %v382_v39, 2147483647 }
  0x5f   : > { %744 = vrcp.f32 %v266_v52  ;;  %v387_v52 = vsel %vm373_vm7, 3, %v875_v37  ;;  %v399_v6 = vsel %vm398_vm15, %v395_v58, %v397_v4  ;;  %v415_v10 = vsel %vm340_vm0, %v384_v44, 2147483647 }
  0x60   : > { %v400_v60 = vsel %vm340_vm0, %v387_v52, 2147483647  ;;  %vm404_vm2 = vcmp.lt.s32.totalorder %v399_v6, %v403_v1  ;;  %v416_v11 = vsel %vm340_vm0, %v386_v51, 2147483647  ;;  %v419_v14 = vsel %vm340_vm0, %v388_v57, 2147483647 }
  0x61   : > { %vm401_vm1 = vcmp.lt.s32.totalorder %v396_v59, %v400_v60  ;;  %v405_v12 = vsel %vm404_vm2, %v399_v6, %v403_v1  ;;  %vm417_vm4 = vcmp.lt.s32.totalorder %v414_v9, %v416_v11  ;;  %vm420_vm6 = vcmp.lt.s32.totalorder %v415_v10, %v419_v14 }
  0x62   : > { %v402_v7 = vsel %vm401_vm1, %v396_v59, %v400_v60  ;;  %vm410_vm5 = vcmp.lt.s32.totalorder %v405_v12, %v409_v8  ;;  %v418_v15 = vsel %vm417_vm4, %v414_v9, %v416_v11  ;;  %v422_v16 = vsel %vm340_vm0, %v390_v61, 2147483647 }
  0x63   : > { %vm407_vm3 = vcmp.lt.s32.totalorder %v402_v7, %v406_v5  ;;  %v411_v17 = vsel %vm410_vm5, %v405_v12, %v409_v8  ;;  %v421_v18 = vsel %vm420_vm6, %v415_v10, %v419_v14  ;;  %vm423_vm7 = vcmp.lt.s32.totalorder %v418_v15, %v422_v16 }
  0x64   : > { %v408_v13 = vsel %vm407_vm3, %v402_v7, %v406_v5  ;;  %v425_v19 = vsel %vm340_vm0, %v392_v54, 2147483647  ;;  %v424_v20 = vsel %vm423_vm7, %v418_v15, %v422_v16  ;;  %v428_v21 = vsel %vm340_vm0, %v394_v55, 2147483647 }
  0x65   : > { %v731_v26 = vpop.eup %730  ;;  %vm412_vm8 = vcmp.lt.s32.totalorder %v411_v17, %v408_v13  ;;  %vm426_vm9 = vcmp.lt.s32.totalorder %v421_v18, %v425_v19  ;;  %vm429_vm10 = vcmp.lt.s32.totalorder %v424_v20, %v428_v21 }
  0x66   : > { %v733_v27 = vpop.eup %732  ;;  %v311_v31 = vadd.f32 %v731_v26, %v305_v23  ;;  %v413_v22 = vsel %vm412_vm8, %v411_v17, %v408_v13 }
  0x67   : > { %v735_v32 = vpop.eup %734  ;;  %v312_v34 = vadd.f32 %v733_v27, %v305_v23  ;;  %v427_v23 = vsel %vm426_vm9, %v421_v18, %v425_v19  ;;  %v433_v26 = vcvt.s32.f32 %v413_v22 }
  0x68   : > { %v737_v35 = vpop.eup %736  ;;  %v1116_v36 = vmul.f32 38.0, %v311_v31  ;;  %v1129_v46 = vmul.f32 %v735_v32, %v319_v42 }
  0x69   : > { %v739_v40 = vpop.eup %738  ;;  %v1123_v41 = vmul.f32 38.0, %v312_v34  ;;  %v1131_v47 = vmul.f32 %v737_v35, %v319_v42  ;;  %453 = vst.msk [vmem:[%s1015_s8 + $0x50] sm:$0xff] %vm340_vm0, %v433_v26 }
  0x6a   : > { %v741_v45 = vpop.eup %740  ;;  %v1135_v49 = vmul.f32 %v739_v40, %v322_v28  ;;  %v435_v0 = vsub.f32 %v1116_v36, %v1129_v46  ;;  %v439_v32 = vadd.f32 %v1129_v46, %v1116_v36 }
  0x6b   : > { %v743_v48 = vpop.eup %742  ;;  %v1137_v50 = vmul.f32 %v741_v45, %v322_v28  ;;  %v440_v34 = vadd.f32 %v1131_v47, %v1123_v41 }
  0x6c   : > { %v745_v53 = vpop.eup %744  ;;  %v315_v56 = vadd.f32 %v743_v48, %v309_v24  ;;  %445 = vst.msk [vmem:[%s1015_s8 + $0x10] sm:$0xff] %vm340_vm0, %v435_v0  ;;  %v436_v24 = vsub.f32 %v1123_v41, %v1131_v47  ;;  %449 = vst.msk [vmem:[%s1015_s8 + $0x30] sm:$0xff] %vm340_vm0, %v439_v32 }
  0x6d   : > { %v316_v62 = vadd.f32 %v745_v53, %v310_v25  ;;  %v430_v25 = vsel %vm429_vm10, %v424_v20, %v428_v21  ;;  %450 = vst.msk [vmem:[%s1015_s8 + $0x38] sm:$0xff] %vm340_vm0, %v440_v34 }
  0x6e   : > { %v317_v2 = vmul.f32 38.0, %v315_v56  ;;  %vm431_vm11 = vcmp.lt.s32.totalorder %v430_v25, %v427_v23  ;;  %446 = vst.msk [vmem:[%s1015_s8 + $0x18] sm:$0xff] %vm340_vm0, %v436_v24 }
  0x6f   : > { %v318_v3 = vmul.f32 38.0, %v316_v62  ;;  %v432_v37 = vsel %vm431_vm11, %v430_v25, %v427_v23 }
  0x70   : > { %v437_v27 = vsub.f32 %v317_v2, %v1135_v49  ;;  %v441_v35 = vadd.f32 %v1135_v49, %v317_v2  ;;  %v434_v36 = vcvt.s32.f32 %v432_v37 }
  0x71   : > { %v438_v31 = vsub.f32 %v318_v3, %v1137_v50  ;;  %v442_v38 = vadd.f32 %v1137_v50, %v318_v3 }
  0x72   : > { %447 = vst.msk [vmem:[%s1015_s8 + $0x20] sm:$0xff] %vm340_vm0, %v437_v27  ;;  %451 = vst.msk [vmem:[%s1015_s8 + $0x40] sm:$0xff] %vm340_vm0, %v441_v35 }
  0x73   : > { %448 = vst.msk [vmem:[%s1015_s8 + $0x28] sm:$0xff] %vm340_vm0, %v438_v31  ;;  %452 = vst.msk [vmem:[%s1015_s8 + $0x48] sm:$0xff] %vm340_vm0, %v442_v38 }
  0x74   : > { %454 = vst.msk [vmem:[%s1015_s8 + $0x58] sm:$0xff] %vm340_vm0, %v434_v36 }
  0x75   : > { %787 = shalt.err (!%p784_p9)
}
  0x76   : > { %s788_s25 = scalar_lea.hbm %s1188_s30, 1536  ;;  %s792_s26 = scalar_lea.hbm %s1273_s1, 9216 }
  0x77   : > { %p789_p12 = scmp.ne.s32.totalorder %s1188_s30, %s788_s25  ;;  %p793_p7 = scmp.lt.s32.totalorder %s1188_s30, %s1273_s1 }
  0x78   : > { %p794_p0 = scmp.lt.s32.totalorder %s792_s26, %s788_s25 }
  0x79   : > { %p790_p13 = pnand %p789_p12, %p966_p10 }
  0x7a   : > { %p795_p1 = por %p794_p0, %p793_p7 }
  0x7b   : > { %p791_p2 = pneg %p790_p13 }
  0x7d   : > { %p796_p3 = pnand %p795_p1, %p791_p2 }
  0x7f   : > { %799 = shalt.err (!%p796_p3)
}
  0x80   : > { %s877_s23 = smov 128   ;;  %s878_s24 = smov 8   ;;  %vm466_vm0 = vcmask 0  }
  0x81   : > { %633 = dma.vmem_to_hbm [thread:$0]  (%p966_p10), %s1204_s12, 1536, %s1188_s30, %s469_s4, %s877_s23, %s877_s23, %s878_s24  }
  0x82   : > { %p202_p4 = scmp.lt.s32.totalorder %s1174_s13, 5 }
  0x84   : > { %s1298_s13 = smov (!%p202_p4, %s1174_s13), 5 }
  0x85   : > { %s204_s18 = scalar_lea.vmem %s1274_s2, %s1298_s13 }
  0xe1   : > { %v459_v39 = vpop.xlane.xlu0 %458 }
  0xe2   : > { %v460_v40 = vrot.slane %v459_v39, 4 }
  0xe4   : > { %v461_v41 = vmax.f32 %v459_v39, %v460_v40 }
  0xe6   : > { %v462_v42 = vrot.slane %v461_v41, 2 }
  0xe8   : > { %v463_v43 = vmax.f32 %v461_v41, %v462_v42 }
  0xea   : > { %v464_v44 = vrot.slane %v463_v43, 1 }
  0xec   : > { %v465_v45 = vmax.f32 %v463_v43, %v464_v44 }
  0xee   : > { %467 = vst.msk [vmem:[%s204_s18] sm:$0x1] %vm466_vm0, %v465_v45 }
  0xef PF: > { %p644_p10 = scmp.ge.s32.totalorder %s870_s16, 2  ;;  %s509_s27 = sand.u32 1, %s842_s9  }
  0xf0   : > { %s510_s6 = scalar_lea.sflag [#allocation4], %s509_s27 }
  0xf1   : > { %p640_p6 = pnand %p644_p10, %p971_p11 }
  0xf3   : > { %p641_p5 = pneg %p640_p6 }
  0xf5   : > { %837 = dma.done.wait (%p641_p5), %s510_s6, 1536  }
  0xf6   : > { %839 = vsyncadd (%p641_p5), %s510_s6, 4294965760  ;;  %s19_s16 = sadd.s32 1, %s870_s16   ;;  %s1280_s9 = smov %s846_s10 }
  0xf7   : > { %p16_p8 = scmp.ge.s32.totalorder %s19_s16, 8   ;;  %s1281_s10 = smov %s850_s11 }
  0xf8   : > { %s1282_s11 = smov %s978_s5  ;;  %s1283_s12 = smov %s862_s14 }
  0xf9   : > { %s1284_s13 = smov %s866_s15  ;;  %s1285_s14 = smov %s1288_s19 }
  0xfa   : > { %s1286_s15 = smov %s1292_s20  ;;  %18 = sbr.rel (!%p16_p8) target bundleno = 7 (0x7), region = 82 }
  0xff   :  { %523 = vsyncpa [#allocation3], 1 }
 0x100   :  { %525 = vsyncpa [#allocation3 + $0x1], 1 }
 0x101   :  { %526 = vsyncpa [#allocation4], 1 }
 0x102   :  { %528 = vsyncpa [#allocation4 + $0x1], 1 }

</bundles_post_ra>
